<compile_context>
chip_gen: v6e
topology: v6e:2x2x1
jax: 0.10.0
libtpu: 0.0.40
codegen_flags: <defaults>
</compile_context>

<pallas_src>
import jax
import jax.numpy as jnp
from jax.experimental import pallas as pl
from jax.experimental.pallas import tpu as pltpu


NODE_TYPES = ("ticker", "institution", "mutual_fund", "news")

EDGE_TYPES = (
    ("ticker", "holds_it", "institution"),
    ("ticker", "holds_mt", "mutual_fund"),
    ("news", "about_nt", "ticker"),
    ("mutual_fund", "rev_holds_mt", "ticker"),
    ("institution", "rev_holds_it", "ticker"),
    ("ticker", "rev_about_nt", "news"),
)

ROW_TILE = 512  # max dst-row tile; at demo sizes a single tile covers all rows


def _round_up(x, m):
    return ((x + m - 1) // m) * m


# ----------------------------- Pallas kernel --------------------------------

def _hetero_sage_fused_kernel(a_ref, xsw_ref, xd_ref, wrs_ref, bs_ref, o_ref):
    # Grid: (dst node type [parallel], dst-row tile [parallel]).
    # a_ref  : [1, tm, K_pad]     row-normalized adjacencies, edge types concatenated on K
    # xsw_ref: [1, K_pad, H_pad]  pre-transformed neighbor features (x_src @ W_l), concat on K
    # xd_ref : [1, tm, Fd_pad]    destination (root) features
    # wrs_ref: [1, Fd_pad, H_pad] sum over incoming edge types of W_r
    # bs_ref : [1, 1, H_pad]      sum over incoming edge types of b_l
    # o_ref  : [1, tm, H_pad]     lane-dense output tile
    msg = jnp.dot(a_ref[0], xsw_ref[0], preferred_element_type=jnp.float32)
    root = jnp.dot(xd_ref[0], wrs_ref[0], preferred_element_type=jnp.float32)
    o_ref[0] = (msg + root + bs_ref[0]).astype(o_ref.dtype)


def hetero_conv_fused(pack):
    """Entire HeteroConv (all SAGEConvs, aggr='sum') in one gridded pallas_call."""
    a, xsw, xd, wrs, bs = pack["a"], pack["xsw"], pack["xd"], pack["wrs"], pack["bs"]
    n_types, n_pad, k_pad = a.shape
    h_pad = xsw.shape[2]
    fd_pad = xd.shape[2]
    tm = pack["tm"]
    grid = (n_types, n_pad // tm)
    return pl.pallas_call(
        _hetero_sage_fused_kernel,
        out_shape=jax.ShapeDtypeStruct((n_types, n_pad, h_pad), jnp.float32),
        grid_spec=pltpu.PrefetchScalarGridSpec(
            num_scalar_prefetch=0,
            grid=grid,
            in_specs=[
                pl.BlockSpec((1, tm, k_pad), lambda t, i: (t, i, 0)),
                pl.BlockSpec((1, k_pad, h_pad), lambda t, i: (t, 0, 0)),
                pl.BlockSpec((1, tm, fd_pad), lambda t, i: (t, i, 0)),
                pl.BlockSpec((1, fd_pad, h_pad), lambda t, i: (t, 0, 0)),
                pl.BlockSpec((1, 1, h_pad), lambda t, i: (t, 0, 0)),
            ],
            out_specs=pl.BlockSpec((1, tm, h_pad), lambda t, i: (t, i, 0)),
        ),
        compiler_params=pltpu.CompilerParams(
            dimension_semantics=("parallel", "parallel"),
        ),
    )(a, xsw, xd, wrs, bs)


# ------------------------------- glue / packing ------------------------------

def init_sage_params(key, f_src, f_dst, hidden):
    k1, k2, k3 = jax.random.split(key, 3)
    # Deterministic glorot-style init; weights stored as [in, out]
    # (torch Linear stores [out, in]; pre-transposed for matmul).
    scale_l = (2.0 / (f_src + hidden)) ** 0.5
    scale_r = (2.0 / (f_dst + hidden)) ** 0.5
    return {
        "w_l": scale_l * jax.random.normal(k1, (f_src, hidden), jnp.float32),
        "w_r": scale_r * jax.random.normal(k2, (f_dst, hidden), jnp.float32),
        "b_l": 0.01 * jax.random.normal(k3, (1, hidden), jnp.float32),
    }


def init_hetero_conv_params(key, feat_dims, hidden):
    keys = jax.random.split(key, len(EDGE_TYPES))
    return {
        et: init_sage_params(k, feat_dims[et[0]], feat_dims[et[2]], hidden)
        for et, k in zip(EDGE_TYPES, keys)
    }


def pack_inputs(x_dict, edge_index_dict, params, num_nodes, feat_dims, hidden):
    """One-time preprocessing (off the hot path):
       - row-normalized (mean) adjacencies, concatenated per dst type along the K axis
       - pre-transformed neighbor features xsW^e = x_src^e @ W_l^e, concatenated on K
       - per-dst-type pre-summed root weights / biases
       all packed into zero-padded, dst-type-stacked slabs for a single fused launch."""
    hi = jax.lax.Precision.HIGHEST
    f32 = jnp.float32
    h_pad = _round_up(hidden, 128)
    n_types = len(NODE_TYPES)

    incoming = {t: tuple(et for et in EDGE_TYPES if et[2] == t) for t in NODE_TYPES}
    for t in NODE_TYPES:
        # Guard: every dst type in this model has >= 1 incoming edge type.
        assert incoming[t], f"node type {t!r} has no incoming edge types"

    n_pad = max(_round_up(num_nodes[t], 8) for t in NODE_TYPES)
    if n_pad > ROW_TILE:
        n_pad = _round_up(n_pad, ROW_TILE)
        tm = ROW_TILE
    else:
        tm = n_pad
    fd_pad = _round_up(max(feat_dims[t] for t in NODE_TYPES), 128)
    k_pad = _round_up(max(sum(num_nodes[et[0]] for et in incoming[t]) for t in NODE_TYPES), 128)

    a = jnp.zeros((n_types, n_pad, k_pad), f32)
    xsw = jnp.zeros((n_types, k_pad, h_pad), f32)
    xd = jnp.zeros((n_types, n_pad, fd_pad), f32)
    wrs = jnp.zeros((n_types, fd_pad, h_pad), f32)
    bs = jnp.zeros((n_types, 1, h_pad), f32)

    for ti, dst_t in enumerate(NODE_TYPES):
        n_dst, fd = num_nodes[dst_t], feat_dims[dst_t]
        xd = xd.at[ti, :n_dst, :fd].set(x_dict[dst_t])

        wr_sum = jnp.zeros((fd, hidden), f32)
        b_sum = jnp.zeros((1, hidden), f32)
        off = 0
        for et in incoming[dst_t]:
            src_t = et[0]
            n_src = num_nodes[src_t]
            p = params[et]

            # Dense row-normalized adjacency: A[i, j] = (#edges j->i) / deg(i);
            # isolated rows stay zero (PyG scatter-mean semantics).
            src, dst = edge_index_dict[et][0], edge_index_dict[et][1]
            adj = jnp.zeros((n_dst, n_src), f32).at[dst, src].add(1.0)
            deg = adj.sum(axis=1, keepdims=True)
            adj = adj / jnp.where(deg > 0.0, deg, 1.0)
            a = a.at[ti, :n_dst, off:off + n_src].set(adj)

            # Hoisted neighbor transform (computed once, high precision, off hot path).
            xsw = xsw.at[ti, off:off + n_src, :hidden].set(
                jnp.dot(x_dict[src_t], p["w_l"], precision=hi))

            wr_sum = wr_sum + p["w_r"]
            b_sum = b_sum + p["b_l"]
            off += n_src

        wrs = wrs.at[ti, :fd, :hidden].set(wr_sum)
        bs = bs.at[ti, :, :hidden].set(b_sum)

    return dict(a=a, xsw=xsw, xd=xd, wrs=wrs, bs=bs, tm=tm)


def hetero_gcn_encoder_forward(pack, num_nodes, hidden):
    out_pad = hetero_conv_fused(pack)
    # The reference module also runs conv2 on relu(x_dict) and discards its result;
    # it has no effect on the returned values, so it is dropped (would be DCE'd under
    # jit anyway) — halves kernel launches and HBM traffic.
    return {nt: out_pad[ti, :num_nodes[nt], :hidden] for ti, nt in enumerate(NODE_TYPES)}


# ------------------------ pure-JAX reference (for checking) ------------------

def _reference_hetero_conv(x_dict, edge_index_dict, params, num_nodes):
    hi = jax.lax.Precision.HIGHEST
    out = {}
    for et in EDGE_TYPES:
        src_t, _, dst_t = et
        n_src, n_dst = num_nodes[src_t], num_nodes[dst_t]
        src, dst = edge_index_dict[et][0], edge_index_dict[et][1]
        a = jnp.zeros((n_dst, n_src), jnp.float32).at[dst, src].add(1.0)
        deg = a.sum(axis=1, keepdims=True)
        a = a / jnp.where(deg > 0.0, deg, 1.0)
        p = params[et]
        o = (jnp.dot(jnp.dot(a, x_dict[src_t], precision=hi), p["w_l"], precision=hi)
             + jnp.dot(x_dict[dst_t], p["w_r"], precision=hi) + p["b_l"])
        out[dst_t] = o if dst_t not in out else out[dst_t] + o
    return out


# ---------------------------------- main -------------------------------------

if __name__ == "__main__":
    hidden = 32
    num_nodes = {"ticker": 12, "institution": 6, "mutual_fund": 8, "news": 10}
    feat_dims = {"ticker": 16, "institution": 8, "mutual_fund": 12, "news": 20}
    num_edges = 24

    root = jax.random.PRNGKey(0)
    k_feat, k_edge, k_p1 = jax.random.split(root, 3)

    # Node features per node type.
    feat_keys = jax.random.split(k_feat, len(NODE_TYPES))
    x_dict = {
        nt: jax.random.normal(k, (num_nodes[nt], feat_dims[nt]), jnp.float32)
        for nt, k in zip(NODE_TYPES, feat_keys)
    }

    # Random edge indices per edge type: [2, E] with row0 = src ids, row1 = dst ids.
    edge_keys = jax.random.split(k_edge, len(EDGE_TYPES))
    edge_index_dict = {}
    for et, k in zip(EDGE_TYPES, edge_keys):
        ks, kd = jax.random.split(k)
        src = jax.random.randint(ks, (num_edges,), 0, num_nodes[et[0]], jnp.int32)
        dst = jax.random.randint(kd, (num_edges,), 0, num_nodes[et[2]], jnp.int32)
        edge_index_dict[et] = jnp.stack([src, dst], axis=0)

    params1 = init_hetero_conv_params(k_p1, feat_dims, hidden)

    # One-time cached preprocessing: mean-adjacencies, hoisted x@W_l, pre-summed W_r/b,
    # padded & stacked slabs for the single fused launch.
    pack = pack_inputs(x_dict, edge_index_dict, params1, num_nodes, feat_dims, hidden)

    conv_out = hetero_gcn_encoder_forward(pack, num_nodes, hidden)
    conv_out = jax.tree_util.tree_map(jax.block_until_ready, conv_out)

    # Shape / dtype sanity: output dict has every dst node type with [N_dst, hidden].
    for nt in NODE_TYPES:
        assert conv_out[nt].shape == (num_nodes[nt], hidden), conv_out[nt].shape
        assert conv_out[nt].dtype == jnp.float32

    # Numerical sanity vs. a pure-JAX reference (loose tol covers MXU rounding).
    ref = _reference_hetero_conv(x_dict, edge_index_dict, params1, num_nodes)
    for nt in NODE_TYPES:
        err = float(jnp.max(jnp.abs(conv_out[nt] - ref[nt])))
        assert err < 2e-2, (nt, err)

    print("KERNEL_OK")
</pallas_src>

<mosaic_0001>
module attributes {stable_mosaic.version = 11 : i64} {
  func.func @_hetero_sage_fused_kernel(%arg0: i32, %arg1: i32, %arg2: memref<1x16x128xf32, #tpu.memory_space<vmem>>, %arg3: memref<1x128x128xf32, #tpu.memory_space<vmem>>, %arg4: memref<1x16x128xf32, #tpu.memory_space<vmem>>, %arg5: memref<1x128x128xf32, #tpu.memory_space<vmem>>, %arg6: memref<1x1x128xf32, #tpu.memory_space<vmem>>, %arg7: memref<1x16x128xf32, #tpu.memory_space<vmem>>) attributes {dimension_semantics = [#tpu.dimension_semantics<parallel>, #tpu.dimension_semantics<parallel>], iteration_bounds = array<i64: 4, 1>, scalar_prefetch = 0 : i64, scratch_operands = 0 : i64, tpu.core_type = #tpu.core_type<tc>, window_params = [{transform_indices = @transform_0, window_bounds = array<i64: 1, 16, 128>}, {transform_indices = @transform_1, window_bounds = array<i64: 1, 128, 128>}, {transform_indices = @transform_2, window_bounds = array<i64: 1, 16, 128>}, {transform_indices = @transform_3, window_bounds = array<i64: 1, 128, 128>}, {transform_indices = @transform_4, window_bounds = array<i64: 1, 1, 128>}, {transform_indices = @transform_5, window_bounds = array<i64: 1, 16, 128>}]} {
    %c0 = arith.constant 0 : index
    %c0_0 = arith.constant 0 : index
    %c0_1 = arith.constant 0 : index
    %0 = vector.load %arg2[%c0, %c0_0, %c0_1] : memref<1x16x128xf32, #tpu.memory_space<vmem>>, vector<1x16x128xf32>
    %1 = vector.shape_cast %0 : vector<1x16x128xf32> to vector<16x128xf32>
    %c0_2 = arith.constant 0 : index
    %c0_3 = arith.constant 0 : index
    %c0_4 = arith.constant 0 : index
    %2 = vector.load %arg3[%c0_2, %c0_3, %c0_4] : memref<1x128x128xf32, #tpu.memory_space<vmem>>, vector<1x128x128xf32>
    %3 = vector.shape_cast %2 : vector<1x128x128xf32> to vector<128x128xf32>
    %cst = arith.constant dense<0.000000e+00> : vector<16x128xf32>
    %4 = tpu.matmul %1, %3, %cst {dimension_numbers = #tpu.dot_dimension_numbers<[1], [0], [0], [1], [0, 0, 1, 1], [], []>} : vector<16x128xf32>, vector<128x128xf32>, vector<16x128xf32> -> vector<16x128xf32>
    %c0_5 = arith.constant 0 : index
    %c0_6 = arith.constant 0 : index
    %c0_7 = arith.constant 0 : index
    %5 = vector.load %arg4[%c0_5, %c0_6, %c0_7] : memref<1x16x128xf32, #tpu.memory_space<vmem>>, vector<1x16x128xf32>
    %6 = vector.shape_cast %5 : vector<1x16x128xf32> to vector<16x128xf32>
    %c0_8 = arith.constant 0 : index
    %c0_9 = arith.constant 0 : index
    %c0_10 = arith.constant 0 : index
    %7 = vector.load %arg5[%c0_8, %c0_9, %c0_10] : memref<1x128x128xf32, #tpu.memory_space<vmem>>, vector<1x128x128xf32>
    %8 = vector.shape_cast %7 : vector<1x128x128xf32> to vector<128x128xf32>
    %cst_11 = arith.constant dense<0.000000e+00> : vector<16x128xf32>
    %9 = tpu.matmul %6, %8, %cst_11 {dimension_numbers = #tpu.dot_dimension_numbers<[1], [0], [0], [1], [0, 0, 1, 1], [], []>} : vector<16x128xf32>, vector<128x128xf32>, vector<16x128xf32> -> vector<16x128xf32>
    %10 = arith.addf %4, %9 : vector<16x128xf32>
    %c0_12 = arith.constant 0 : index
    %c0_13 = arith.constant 0 : index
    %c0_14 = arith.constant 0 : index
    %11 = vector.load %arg6[%c0_12, %c0_13, %c0_14] : memref<1x1x128xf32, #tpu.memory_space<vmem>>, vector<1x1x128xf32>
    %12 = vector.shape_cast %11 : vector<1x1x128xf32> to vector<1x128xf32>
    %13 = vector.broadcast %12 : vector<1x128xf32> to vector<16x128xf32>
    %14 = arith.addf %10, %13 : vector<16x128xf32>
    %c0_15 = arith.constant 0 : index
    %c0_16 = arith.constant 0 : index
    %c0_17 = arith.constant 0 : index
    %15 = vector.load %arg7[%c0_15, %c0_16, %c0_17] : memref<1x16x128xf32, #tpu.memory_space<vmem>>, vector<1x16x128xf32>
    %16 = vector.shape_cast %15 : vector<1x16x128xf32> to vector<16x128xf32>
    %17 = vector.shape_cast %14 : vector<16x128xf32> to vector<1x16x128xf32>
    tpu.vector_store %arg7[%c0_15, %c0_16, %c0_17], %17 {strides = array<i32>} : memref<1x16x128xf32, #tpu.memory_space<vmem>>, vector<1x16x128xf32>,
    return
  }
  func.func @transform_0(%arg0: i32, %arg1: i32) -> (i32, i32, i32) {
    %c0_i32 = arith.constant 0 : i32
    %c0_i32_0 = arith.constant 0 : i32
    return %arg0, %arg1, %c0_i32 : i32, i32, i32
  }
  func.func @transform_1(%arg0: i32, %arg1: i32) -> (i32, i32, i32) {
    %c0_i32 = arith.constant 0 : i32
    %c0_i32_0 = arith.constant 0 : i32
    %c0_i32_1 = arith.constant 0 : i32
    return %arg0, %c0_i32, %c0_i32_0 : i32, i32, i32
  }
  func.func @transform_2(%arg0: i32, %arg1: i32) -> (i32, i32, i32) {
    %c0_i32 = arith.constant 0 : i32
    %c0_i32_0 = arith.constant 0 : i32
    return %arg0, %arg1, %c0_i32 : i32, i32, i32
  }
  func.func @transform_3(%arg0: i32, %arg1: i32) -> (i32, i32, i32) {
    %c0_i32 = arith.constant 0 : i32
    %c0_i32_0 = arith.constant 0 : i32
    %c0_i32_1 = arith.constant 0 : i32
    return %arg0, %c0_i32, %c0_i32_0 : i32, i32, i32
  }
  func.func @transform_4(%arg0: i32, %arg1: i32) -> (i32, i32, i32) {
    %c0_i32 = arith.constant 0 : i32
    %c0_i32_0 = arith.constant 0 : i32
    %c0_i32_1 = arith.constant 0 : i32
    return %arg0, %c0_i32, %c0_i32_0 : i32, i32, i32
  }
  func.func @transform_5(%arg0: i32, %arg1: i32) -> (i32, i32, i32) {
    %c0_i32 = arith.constant 0 : i32
    %c0_i32_0 = arith.constant 0 : i32
    return %arg0, %arg1, %c0_i32 : i32, i32, i32
  }
}

</mosaic_0001>

<bundles_post_ra>
// kernel: tpu_custom_call.1
= control target key start
LH: loop header
LB: loop body
LE: loop exit
PB: predicated region body
PF: predicated region fallthrough
CT: control target
= control target key end

     0   :  { %s1511_s0 = inlined_call_operand.hbm [shape: f32[4,16,128], index: 0, kind: input, shape index: {}]   ;;  %s1512_s1 = inlined_call_operand.hbm [shape: f32[4,128,128], index: 1, kind: input, shape index: {}]   ;;  %s1513_s2 = inlined_call_operand.hbm [shape: f32[4,16,128], index: 2, kind: input, shape index: {}]   ;;  %s1514_s3 = inlined_call_operand.hbm [shape: f32[4,128,128], index: 3, kind: input, shape index: {}]   ;;  %s1515_s4 = inlined_call_operand.vmem [shape: f32[4,1,128], index: 4, kind: input, shape index: {}]   ;;  %s1516_s5 = inlined_call_operand.hbm [shape: f32[4,16,128], index: 5, kind: output, shape index: {}]  }
   0x1   :  { %1526 = sst [smem:[#allocation19_spill]] %s1511_s0 }
   0x2   :  { %1527 = sst [smem:[#allocation20_spill]] %s1512_s1 }
   0x3   :  { %10 = vsyncpa [#allocation3], 0 }
   0x4   :  { %12 = vsyncpa [#allocation3 + $0x1], 0 }
   0x5   :  { %13 = vsyncpa [#allocation6], 0 }
   0x6   :  { %15 = vsyncpa [#allocation6 + $0x1], 0 }
   0x7   :  { %16 = vsyncpa [#allocation9], 0 }
   0x8   :  { %18 = vsyncpa [#allocation9 + $0x1], 0 }
   0x9   :  { %19 = vsyncpa [#allocation4], 0 }
   0xa   :  { %21 = vsyncpa [#allocation4 + $0x1], 0  ;;  %s1238_s18 = smov 0   ;;  %s1240_s19 = smov 0  }
   0xb   :  { %s1242_s20 = smov 0   ;;  %s1244_s21 = smov 0  }
   0xc   :  { %s1246_s22 = smov 0   ;;  %s1248_s23 = smov 0  }
   0xd LB: > { %1528 = sst [smem:[#allocation15_spill]] %s1185_s20  ;;  %s1269_s24 = sadd.s32 4294967295, %s1197_s23   ;;  %s1197_s23 = sphi %s1248_s23, %s27_s23   ;;  %s1193_s22 = sphi %s1246_s22, %s1550_s22   ;;  %s1189_s21 = sphi %s1244_s21, %s1549_s21   ;;  %s1185_s20 = sphi %s1242_s20, %s1545_s20   ;;  %s1181_s19 = sphi %s1240_s19, %s1548_s19   ;;  %s1177_s18 = sphi %s1238_s18, %s1547_s18  }
   0xe   : > { %s778_s25 = sadd.s32 4294967294, %s1197_s23   ;;  %s39_s26 = sadd.s32 1, %s1193_s22 }
   0xf   : > { %s48_s27 = sadd.s32 1, %s1185_s20  ;;  %p41_p0 = scmp.ge.s32.totalorder %s39_s26, 4 }
  0x10   : > { %p55_p1 = scmp.ne.s32.totalorder %s1185_s20, %s1181_s19  ;;  %p56_p2 = scmp.eq.s32.totalorder %s1197_s23, 0 }
  0x11   : > { %p61_p3 = scmp.ne.s32.totalorder %s1181_s19, %s1177_s18  ;;  %s1552_s26 = smov (%p41_p0, %s39_s26), 0 }
  0x12   : > { %1529 = sst [smem:[#allocation16_spill]] %s1552_s26  ;;  %p57_p4 = por %p56_p2, %p55_p1 }
  0x13   : > { %p62_p5 = scmp.eq.s32.totalorder %s1269_s24, 0  ;;  %s43_s28 = ssub.s32 %s1193_s22, %s1552_s26 }
  0x14   : > { %p193_p6 = scmp.eq.s32.totalorder %s1269_s24, 3  ;;  %p46_p7 = scmp.eq.s32.totalorder %s43_s28, 0 }
  0x15   : > { %p1285_p8 = por %p62_p5, %p61_p3  ;;  %p199_p10 = scmp.eq.s32.totalorder %s778_s25, 3 }
  0x16   : > { %p1289_p9 = por %p193_p6, %p55_p1  ;;  %p943_p12 = scmp.lt.s32.totalorder %s1197_s23, 4 }
  0x17   : > { %s1294_s6 = scalar_select %p46_p7, %s1185_s20, %s48_s27  }
  0x18   : > { %p1296_p11 = por %p199_p10, %p61_p3  ;;  %s1302_s8 = sand.u32 1, %s1185_s20  }
  0x19   : > { %1532 = sst [smem:[#allocation17_spill]] %s1294_s6  ;;  %p1304_p13 = pnand %p943_p12, %p57_p4 }
  0x1a   : > { %s1533_s7 = scalar_select %p1296_p11, 1, 0 }
  0x1b   : > { %s242_s10 = sand.u32 1, %s1197_s23   ;;  %s1518_s11 = sshll.u32 %s1302_s8, 7 }
  0x1c   : > { %1534 = sst [smem:[#allocation18_spill]] %s1533_s7  ;;  %s1519_s12 = sshll.u32 %s1193_s22, 11 }
  0x1d   : > { %s246_s13 = scalar_lea.vmem [#allocation5], %s1518_s11  ;;  %s1536_s1 = sld [smem:[#allocation20_spill]] }
  0x1e   : > { %s253_s14 = sshll.u32 %s246_s13, 4  ;;  %s1318_s25 = scalar_lea.sflag [#allocation6], %s242_s10  ;;  %s254_s14 = int_to_ptr.vmem [resolvable:$true] %s253_s14 }
  0x1f   : > { %p999_p0 = pneg %p1304_p13  ;;  %s1010_s27 = scalar_lea.vmem %s254_s14, 2048 }
  0x20   : > { %p1011_p1 = scmp.ne.s32.totalorder %s254_s14, %s1010_s27  ;;  %s1199_s28 = smov [#allocation5]  }
  0x21   : > { %s1015_s26 = sshll.u32 %s1199_s28, 4  ;;  %s1016_s26 = int_to_ptr.vmem [resolvable:$false] %s1015_s26 }
  0x22   : > { %p1013_p2 = pnand %p1011_p1, %p999_p0  ;;  %s1017_s13 = scalar_lea.vmem %s1016_s26, 4096 }
  0x23   : > { %s252_s17 = scalar_lea.hbm %s1536_s1, %s1519_s12  ;;  %p1018_p4 = scmp.lt.s32.totalorder %s254_s14, %s1016_s26 }
  0x24   : > { %p1014_p3 = pneg %p1013_p2  ;;  %p1019_p5 = scmp.lt.s32.totalorder %s1017_s13, %s1010_s27 }
  0x26   : > { %p1020_p6 = por %p1019_p5, %p1018_p4 }
  0x28   : > { %p1021_p7 = pnand %p1020_p6, %p1014_p3 }
  0x2a   : > { %1024 = shalt.err (!%p1021_p7)
}
  0x2b   : > { %s1522_s15 = smov 128   ;;  %s1524_s10 = smov 8  }
  0x2c   : > { %932 = dma.hbm_to_vmem [thread:$0]  (!%p1304_p13), %s252_s17, 2048, %s254_s14, %s1318_s25, %s1522_s15, %s1522_s15, %s1524_s10  }
  0x2d   : > { %p793_p10 = scmp.ge.s32.totalorder %s1197_s23, 1  ;;  %p311_p12 = scmp.lt.s32.totalorder %s1197_s23, 5 }
  0x2e   : > { %s781_s16 = sshll.u32 %s1302_s8, 4  ;;  %s805_s27 = sshll.u32 %s1193_s22, 8 }
  0x2f   : > { %p1333_p1 = pnand %p793_p10, %p311_p12  ;;  %s1538_s0 = sld [smem:[#allocation19_spill]] }
  0x30   : > { %s223_s12 = scalar_lea.vmem [#allocation2], %s781_s16  ;;  %s1345_s7 = scalar_lea.hbm %s1513_s2, %s805_s27 }
  0x31   : > { %s232_s1 = sshll.u32 %s223_s12, 4  ;;  %s220_s14 = scalar_lea.sflag [#allocation3], %s1302_s8  ;;  %s233_s1 = int_to_ptr.vmem [resolvable:$true] %s232_s1 }
  0x32   : > { %s1038_s17 = scalar_lea.vmem %s233_s1, 256  ;;  %s1202_s15 = smov [#allocation2]  }
  0x33   : > { %p1039_p2 = scmp.ne.s32.totalorder %s233_s1, %s1038_s17  ;;  %s1043_s10 = sshll.u32 %s1202_s15, 4  ;;  %s1044_s10 = int_to_ptr.vmem [resolvable:$false] %s1043_s10 }
  0x34   : > { %s1045_s28 = scalar_lea.vmem %s1044_s10, 512  ;;  %p1046_p5 = scmp.lt.s32.totalorder %s233_s1, %s1044_s10 }
  0x35   : > { %s231_s11 = scalar_lea.hbm %s1538_s0, %s805_s27  ;;  %p1041_p3 = pnand %p1039_p2, %p999_p0 }
  0x36   : > { %p1047_p6 = scmp.lt.s32.totalorder %s1045_s28, %s1038_s17 }
  0x37   : > { %p1042_p4 = pneg %p1041_p3 }
  0x38   : > { %p1048_p7 = por %p1047_p6, %p1046_p5 }
  0x3a   : > { %p1049_p10 = pnand %p1048_p7, %p1042_p4 }
  0x3c   : > { %1052 = shalt.err (!%p1049_p10)
}
  0x3d   : > { %s1539_s20 = smov 8   ;;  %s1540_s6 = smov 128  }
  0x3e   : > { %929 = dma.hbm_to_vmem [thread:$0]  (!%p1304_p13), %s231_s11, 256, %s233_s1, %s220_s14, %s1540_s6, %s1540_s6, %s1539_s20  }
  0x3f   : > { %s267_s12 = scalar_lea.vmem [#allocation7], %s781_s16  ;;  %s1203_s15 = smov [#allocation7]  }
  0x40   : > { %s276_s27 = sshll.u32 %s267_s12, 4  ;;  %s1071_s10 = sshll.u32 %s1203_s15, 4  ;;  %s277_s27 = int_to_ptr.vmem [resolvable:$true] %s276_s27  ;;  %s1072_s10 = int_to_ptr.vmem [resolvable:$false] %s1071_s10 }
  0x41   : > { %s1066_s13 = scalar_lea.vmem %s277_s27, 256  ;;  %s1073_s17 = scalar_lea.vmem %s1072_s10, 512 }
  0x42   : > { %p1067_p12 = scmp.ne.s32.totalorder %s277_s27, %s1066_s13  ;;  %p1074_p4 = scmp.lt.s32.totalorder %s277_s27, %s1072_s10 }
  0x43   : > { %p1075_p5 = scmp.lt.s32.totalorder %s1073_s17, %s1066_s13 }
  0x44   : > { %p1069_p2 = pnand %p1067_p12, %p999_p0 }
  0x45   : > { %p1076_p6 = por %p1075_p5, %p1074_p4 }
  0x46   : > { %p1070_p3 = pneg %p1069_p2 }
  0x48   : > { %p1077_p7 = pnand %p1076_p6, %p1070_p3 }
  0x4a   : > { %1080 = shalt.err (!%p1077_p7)
}
  0x4b   : > { %935 = dma.hbm_to_vmem [thread:$0]  (!%p1304_p13), %s1345_s7, 256, %s277_s27, %s1318_s25, %s1540_s6, %s1540_s6, %s1539_s20  }
  0x4c   : > { %s1541_s1 = sshll.u32 %s1193_s22, 11  ;;  %s1542_s28 = sshll.u32 %s1302_s8, 7 }
  0x4d   : > { %s296_s14 = scalar_lea.hbm %s1514_s3, %s1541_s1  ;;  %s290_s12 = scalar_lea.vmem [#allocation8], %s1542_s28 }
  0x4e   : > { %s297_s13 = sshll.u32 %s290_s12, 4  ;;  %s287_s15 = scalar_lea.sflag [#allocation9], %s1302_s8  ;;  %s298_s13 = int_to_ptr.vmem [resolvable:$true] %s297_s13 }
  0x4f   : > { %s1094_s10 = scalar_lea.vmem %s298_s13, 2048  ;;  %s1204_s17 = smov [#allocation8]  }
  0x50   : > { %p1095_p10 = scmp.ne.s32.totalorder %s298_s13, %s1094_s10  ;;  %s1099_s0 = sshll.u32 %s1204_s17, 4  ;;  %s1100_s0 = int_to_ptr.vmem [resolvable:$false] %s1099_s0 }
  0x51   : > { %s1101_s7 = scalar_lea.vmem %s1100_s0, 4096  ;;  %p1102_p3 = scmp.lt.s32.totalorder %s298_s13, %s1100_s0 }
  0x52   : > { %p1097_p12 = pnand %p1095_p10, %p999_p0  ;;  %p1103_p4 = scmp.lt.s32.totalorder %s1101_s7, %s1094_s10 }
  0x54   : > { %p1098_p2 = pneg %p1097_p12  ;;  %p1104_p5 = por %p1103_p4, %p1102_p3 }
  0x56   : > { %p1105_p6 = pnand %p1104_p5, %p1098_p2 }
  0x58   : > { %1108 = shalt.err (!%p1105_p6)
}
  0x59   : > { %938 = dma.hbm_to_vmem [thread:$0]  (!%p1304_p13), %s296_s14, 2048, %s298_s13, %s287_s15, %s1540_s6, %s1540_s6, %s1539_s20  }
  0x5a   : > { %315 = sbr.rel (%p1333_p1) target bundleno = 350 (0x15e), region = 40  ;;  %s1385_s8 = sand.u32 (!%p1333_p1), 1, %s1181_s19  }
  0x5b   : > { %s1388_s0 = sshll.u32 (!%p1333_p1), %s1385_s8, 4  ;;  %s318_s25 = scalar_lea.sflag (!%p1333_p1), [#allocation3], %s1385_s8 }
  0x5c   : > { %s321_s27 = scalar_lea.vmem (!%p1333_p1), [#allocation2], %s1388_s0 }
  0x5f   : > { %1160 = dma.done.wait (%p1285_p8), %s318_s25, 256  }
  0x60   : > { %1162 = vsyncadd (%p1285_p8), %s318_s25, 4294967040  ;;  %s326_s9 = sand.u32 1, %s1269_s24   ;;  %s795_s26 = sshll.u32 %s1385_s8, 7 }
  0x61   : > { %s327_s20 = scalar_lea.sflag [#allocation6], %s326_s9  ;;  %s1398_s6 = scalar_lea.vmem [#allocation5], %s795_s26 }
  0x62   : > { %1164 = dma.done.wait (%p1285_p8), %s327_s20, 2304  }
  0x63   : > { %1166 = vsyncadd (%p1285_p8), %s327_s20, 4294964992  ;;  %s339_s1 = scalar_lea.vmem [#allocation7], %s1388_s0  ;;  %s345_s11 = scalar_lea.sflag [#allocation9], %s1385_s8 }
  0x64   : > { %s1406_s16 = scalar_lea.vmem [#allocation8], %s795_s26 }
  0x65   : > { %1168 = dma.done.wait (%p1285_p8), %s345_s11, 2048  }
  0x66   : > { %1170 = vsyncadd (%p1285_p8), %s345_s11, 4294965248  ;;  %v434_v0 = vld [vmem:[%s1406_s16 + $0x78] sm:$0xff]  ;;  %v433_v2 = vld [vmem:[%s1406_s16 + $0x70] sm:$0xff]  ;;  %p395_p8 = scmp.lt.s32.totalorder %s1189_s21, 3  ;;  %s392_s12 = scalar_lea.vmem [#allocation10], %s1388_s0 }
  0x67   : > { %v416_v1 = vld [vmem:[%s1398_s6 + $0x78] sm:$0xff]  ;;  %846 = vmatprep.subr.mxu0 %v434_v0  ;;  %v415_v3 = vld [vmem:[%s1398_s6 + $0x70] sm:$0xff]  ;;  %v432_v4 = vld [vmem:[%s1406_s16 + $0x68] sm:$0xff]  ;;  %s612_s13 = sshll.u32 %s392_s12, 4  ;;  %s809_s15 = sshll.u32 %s1189_s21, 8  ;;  %s1459_s13 = int_to_ptr.vmem [resolvable:$true] %s612_s13 }
  0x68   : > { %881 = vmatprep.subr.mxu1 %v416_v1  ;;  %847 = vmatpush3.msra.mxu0 %v434_v0  ;;  %v414_v5 = vld [vmem:[%s1398_s6 + $0x68] sm:$0xff]  ;;  %v431_v6 = vld [vmem:[%s1406_s16 + $0x60] sm:$0xff]  ;;  %v430_v8 = vld [vmem:[%s1406_s16 + $0x58] sm:$0xff]  ;;  %s396_s24 = scalar_select %p395_p8, %s1189_s21, 3 }
  0x69   : > { %882 = vmatpush3.msra.mxu1 %v416_v1  ;;  %848 = vmatprep.subr.mxu0 %v433_v2  ;;  %v413_v7 = vld [vmem:[%s1398_s6 + $0x60] sm:$0xff]  ;;  %v412_v9 = vld [vmem:[%s1398_s6 + $0x58] sm:$0xff]  ;;  %v429_v10 = vld [vmem:[%s1406_s16 + $0x50] sm:$0xff]  ;;  %s1464_s7 = scalar_lea.hbm %s1516_s5, %s809_s15  ;;  %s597_s0 = scalar_lea.sflag [#allocation4], %s1385_s8 }
  0x6a   : > { %883 = vmatprep.subr.mxu1 %v415_v3  ;;  %849 = vmatpush3.msra.mxu0 %v433_v2  ;;  %v411_v11 = vld [vmem:[%s1398_s6 + $0x50] sm:$0xff]  ;;  %v428_v12 = vld [vmem:[%s1406_s16 + $0x48] sm:$0xff]  ;;  %v427_v14 = vld [vmem:[%s1406_s16 + $0x40] sm:$0xff]  ;;  %s397_s28 = scalar_lea.vmem %s1515_s4, %s396_s24  ;;  %s1109_s25 = scalar_lea.vmem %s1459_s13, 256 }
  0x6b   : > { %884 = vmatpush3.msra.mxu1 %v415_v3  ;;  %850 = vmatprep.subr.mxu0 %v432_v4  ;;  %v410_v13 = vld [vmem:[%s1398_s6 + $0x48] sm:$0xff]  ;;  %v409_v15 = vld [vmem:[%s1398_s6 + $0x40] sm:$0xff]  ;;  %v426_v16 = vld [vmem:[%s1406_s16 + $0x38] sm:$0xff]  ;;  %p1110_p13 = scmp.ne.s32.totalorder %s1459_s13, %s1109_s25  ;;  %s1205_s21 = smov [#allocation10]  }
  0x6c   : > { %885 = vmatprep.subr.mxu1 %v414_v5  ;;  %851 = vmatpush3.msra.mxu0 %v432_v4  ;;  %v408_v17 = vld [vmem:[%s1398_s6 + $0x38] sm:$0xff]  ;;  %v425_v18 = vld [vmem:[%s1406_s16 + $0x30] sm:$0xff]  ;;  %v424_v20 = vld [vmem:[%s1406_s16 + $0x28] sm:$0xff] }
  0x6d   : > { %886 = vmatpush3.msra.mxu1 %v414_v5  ;;  %852 = vmatprep.subr.mxu0 %v431_v6  ;;  %v407_v19 = vld [vmem:[%s1398_s6 + $0x30] sm:$0xff]  ;;  %v406_v21 = vld [vmem:[%s1398_s6 + $0x28] sm:$0xff]  ;;  %v423_v22 = vld [vmem:[%s1406_s16 + $0x20] sm:$0xff]  ;;  %p1111_p0 = pnand %p1110_p13, %p1289_p9 }
  0x6e   : > { %887 = vmatprep.subr.mxu1 %v413_v7  ;;  %853 = vmatpush3.msra.mxu0 %v431_v6  ;;  %v405_v23 = vld [vmem:[%s1398_s6 + $0x20] sm:$0xff]  ;;  %v422_v24 = vld [vmem:[%s1406_s16 + $0x18] sm:$0xff]  ;;  %v421_v26 = vld [vmem:[%s1406_s16 + $0x10] sm:$0xff] }
  0x6f   : > { %888 = vmatpush3.msra.mxu1 %v413_v7  ;;  %854 = vmatprep.subr.mxu0 %v430_v8  ;;  %v404_v25 = vld [vmem:[%s1398_s6 + $0x18] sm:$0xff]  ;;  %v403_v27 = vld [vmem:[%s1398_s6 + $0x10] sm:$0xff]  ;;  %v420_v28 = vld [vmem:[%s1406_s16 + $0x8] sm:$0xff]  ;;  %p1112_p1 = pneg %p1111_p0 }
  0x70   : > { %889 = vmatprep.subr.mxu1 %v412_v9  ;;  %855 = vmatpush3.msra.mxu0 %v430_v8  ;;  %v402_v29 = vld [vmem:[%s1398_s6 + $0x8] sm:$0xff]  ;;  %v419_v30 = vld [vmem:[%s1406_s16] sm:$0xff] }
  0x71   : > { %890 = vmatpush3.msra.mxu1 %v412_v9  ;;  %856 = vmatprep.subr.mxu0 %v429_v10  ;;  %v401_v31 = vld [vmem:[%s1398_s6] sm:$0xff]  ;;  %v418_v34 = vld [vmem:[%s339_s1 + $0x8] sm:$0xff] }
  0x72   : > { %891 = vmatprep.subr.mxu1 %v411_v11  ;;  %857 = vmatpush3.msra.mxu0 %v429_v10  ;;  %v417_v32 = vld [vmem:[%s339_s1] sm:$0xff]  ;;  %v400_v35 = vld [vmem:[%s321_s27 + $0x8] sm:$0xff] }
  0x73   : > { %892 = vmatpush3.msra.mxu1 %v411_v11  ;;  %858 = vmatprep.subr.mxu0 %v428_v12  ;;  %v399_v33 = vld [vmem:[%s321_s27] sm:$0xff]  ;;  %s1113_s27 = sshll.u32 %s1205_s21, 4  ;;  %s1114_s27 = int_to_ptr.vmem [resolvable:$false] %s1113_s27 }
  0x74   : > { %893 = vmatprep.subr.mxu1 %v410_v13  ;;  %859 = vmatpush3.msra.mxu0 %v428_v12  ;;  %v799_v38 = vld [vmem:[%s397_s28] ss:$0 sm:$0xff]  ;;  %s1115_s9 = scalar_lea.vmem %s1114_s27, 512  ;;  %p1116_p7 = scmp.lt.s32.totalorder %s1459_s13, %s1114_s27 }
  0x75   : > { %894 = vmatpush3.msra.mxu1 %v410_v13  ;;  %860 = vmatprep.subr.mxu0 %v427_v14  ;;  %p1117_p10 = scmp.lt.s32.totalorder %s1115_s9, %s1109_s25 }
  0x76   : > { %895 = vmatprep.subr.mxu1 %v409_v15  ;;  %861 = vmatpush3.msra.mxu0 %v427_v14 }
  0x77   : > { %896 = vmatpush3.msra.mxu1 %v409_v15  ;;  %862 = vmatprep.subr.mxu0 %v426_v16  ;;  %p1118_p12 = por %p1117_p10, %p1116_p7 }
  0x78   : > { %897 = vmatprep.subr.mxu1 %v408_v17  ;;  %863 = vmatpush3.msra.mxu0 %v426_v16 }
  0x79   : > { %898 = vmatpush3.msra.mxu1 %v408_v17  ;;  %864 = vmatprep.subr.mxu0 %v425_v18  ;;  %p1119_p2 = pnand %p1118_p12, %p1112_p1 }
  0x7a   : > { %899 = vmatprep.subr.mxu1 %v407_v19  ;;  %865 = vmatpush3.msra.mxu0 %v425_v18 }
  0x7b   : > { %900 = vmatpush3.msra.mxu1 %v407_v19  ;;  %866 = vmatprep.subr.mxu0 %v424_v20 }
  0x7c   : > { %901 = vmatprep.subr.mxu1 %v406_v21  ;;  %867 = vmatpush3.msra.mxu0 %v424_v20 }
  0x7d   : > { %902 = vmatpush3.msra.mxu1 %v406_v21  ;;  %868 = vmatprep.subr.mxu0 %v423_v22 }
  0x7e   : > { %903 = vmatprep.subr.mxu1 %v405_v23  ;;  %869 = vmatpush3.msra.mxu0 %v423_v22 }
  0x7f   : > { %904 = vmatpush3.msra.mxu1 %v405_v23  ;;  %870 = vmatprep.subr.mxu0 %v422_v24 }
  0x80   : > { %905 = vmatprep.subr.mxu1 %v404_v25  ;;  %871 = vmatpush3.msra.mxu0 %v422_v24 }
  0x81   : > { %906 = vmatpush3.msra.mxu1 %v404_v25  ;;  %872 = vmatprep.subr.mxu0 %v421_v26 }
  0x82   : > { %907 = vmatprep.subr.mxu1 %v403_v27  ;;  %873 = vmatpush3.msra.mxu0 %v421_v26 }
  0x83   : > { %908 = vmatpush3.msra.mxu1 %v403_v27  ;;  %874 = vmatprep.subr.mxu0 %v420_v28 }
  0x84   : > { %909 = vmatprep.subr.mxu1 %v402_v29  ;;  %875 = vmatpush3.msra.mxu0 %v420_v28 }
  0x85   : > { %910 = vmatpush3.msra.mxu1 %v402_v29  ;;  %876 = vmatprep.subr.mxu0 %v419_v30 }
  0x86   : > { %911 = vmatprep.subr.mxu1 %v401_v31  ;;  %877 = vmatpush3.msra.mxu0 %v419_v30 }
  0x87   : > { %878 = vmatprep.mubr.f32.mxu0 %v417_v32  ;;  %912 = vmatpush3.msra.mxu1 %v401_v31 }
  0x88   : > { %913 = vmatprep.mubr.f32.mxu1 %v399_v33  ;;  %879 = vmatmul.mubr.f32.vlgmr.msra.gmra.mxu0 %v418_v34 }
  0x89   : > { %914 = vmatmul.mubr.f32.vlgmr.msra.gmra.mxu1 %v400_v35 }
 0x148   : > { %v880_v36 = vpop.f32.mrf.mxu0 }
 0x149   : > { %v915_v37 = vpop.f32.mrf.mxu1 }
 0x14a   : > { %v582_v39 = vadd.f32 %v915_v37, %v880_v36  ;;  %v501_v40 = vpop.f32.mrf.mxu0 }
 0x14b   : > { %v576_v41 = vpop.f32.mrf.mxu1 }
 0x14c   : > { %v593_v42 = vadd.f32 %v799_v38, %v582_v39  ;;  %v577_v43 = vadd.f32 %v576_v41, %v501_v40 }
 0x14e   : > { %595 = vst [vmem:[%s392_s12 + $0x8] sm:$0xff] %v593_v42  ;;  %v592_v44 = vadd.f32 %v799_v38, %v577_v43 }
 0x150   : > { %594 = vst [vmem:[%s392_s12] sm:$0xff] %v592_v44 }
 0x151   : > { %1122 = shalt.err (!%p1119_p2)
}
 0x152   : > { %s1123_s26 = scalar_lea.hbm %s1464_s7, 256  ;;  %s1127_s1 = scalar_lea.hbm %s1516_s5, 1024 }
 0x153   : > { %p1124_p3 = scmp.ne.s32.totalorder %s1464_s7, %s1123_s26  ;;  %p1128_p6 = scmp.lt.s32.totalorder %s1464_s7, %s1516_s5 }
 0x154   : > { %p1129_p8 = scmp.lt.s32.totalorder %s1127_s1, %s1123_s26 }
 0x155   : > { %p1125_p4 = pnand %p1124_p3, %p1289_p9 }
 0x156   : > { %p1130_p13 = por %p1129_p8, %p1128_p6 }
 0x157   : > { %p1126_p5 = pneg %p1125_p4 }
 0x159   : > { %p1131_p0 = pnand %p1130_p13, %p1126_p5 }
 0x15b   : > { %1134 = shalt.err (!%p1131_p0)
}
 0x15c   : > { %s1206_s24 = smov 128   ;;  %s1207_s29 = smov 8  }
 0x15d   : > { %924 = dma.vmem_to_hbm [thread:$0]  (%p1289_p9), %s1459_s13, 256, %s1464_s7, %s597_s0, %s1206_s24, %s1206_s24, %s1207_s29  }
 0x15e PF: > { %p944_p1 = scmp.ge.s32.totalorder %s1197_s23, 2  ;;  %s627_s28 = sand.u32 1, %s1177_s18  }
 0x15f   : > { %s628_s12 = scalar_lea.sflag [#allocation4], %s627_s28 }
 0x160   : > { %p940_p7 = pnand %p944_p1, %p1296_p11 }
 0x162   : > { %p941_p10 = pneg %p940_p7 }
 0x164   : > { %1172 = dma.done.wait (%p941_p10), %s628_s12, 256  }
 0x165   : > { %1174 = vsyncadd (%p941_p10), %s628_s12, 4294967040  ;;  %s27_s23 = sadd.s32 1, %s1197_s23   ;;  %s1544_s15 = sld [smem:[#allocation15_spill]] }
 0x166   : > { %p24_p12 = scmp.ge.s32.totalorder %s27_s23, 6   ;;  %s1545_s20 = sld [smem:[#allocation17_spill]] }
 0x167   : > { %s1546_s30 = sld [smem:[#allocation16_spill]]  ;;  %s1547_s18 = smov %s1181_s19 }
 0x168   : > { %s1549_s21 = smov %s1193_s22 }
 0x169   :  { %26 = sbr.rel (!%p24_p12) target bundleno = 13 (0xd), region = 125 }
 0x16b   : > { %s1548_s19 = smov %s1544_s15 }
 0x16d   : > { %s1550_s22 = smov %s1546_s30 }
 0x16e   :  { %633 = vsyncpa [#allocation3], 1 }
 0x16f   :  { %635 = vsyncpa [#allocation3 + $0x1], 1 }
 0x170   :  { %636 = vsyncpa [#allocation6], 1 }
 0x171   :  { %638 = vsyncpa [#allocation6 + $0x1], 1 }
 0x172   :  { %639 = vsyncpa [#allocation9], 1 }
 0x173   :  { %641 = vsyncpa [#allocation9 + $0x1], 1 }
 0x174   :  { %642 = vsyncpa [#allocation4], 1 }
 0x175   :  { %644 = vsyncpa [#allocation4 + $0x1], 1 }

</bundles_post_ra>
